<compile_context>
chip_gen: v5e
topology: v5e:2x2
jax: 0.10.0
libtpu: 0.0.40
codegen_flags: <defaults>
</compile_context>

<pallas_src>
import functools

import jax
import jax.numpy as jnp
from jax.experimental import pallas as pl
from jax.experimental.pallas import tpu as pltpu


# ----------------------------------------------------------------------------
# helpers
# ----------------------------------------------------------------------------
def _round_up(x, m):
    return ((x + m - 1) // m) * m


def _pad2d(x, rows, cols):
    r, c = x.shape
    return jnp.pad(x, ((0, rows - r), (0, cols - c)))


def _vmem_capacity_bytes():
    """Generation-aware VMEM capacity (v5e/v6e: 128 MiB, v7x: 64 MiB)."""
    try:
        info = pltpu.get_tpu_info()
        cap = int(getattr(info, "vmem_capacity_bytes", 0) or 0)
        if cap > 0:
            return cap
    except Exception:
        pass
    return 64 << 20  # conservative fallback = v7x per-TensorCore VMEM


def _pick_tiles(n):
    """Row tile TM, reduction tile TK, padded node count.

    TK is made large (per review: per-grid-step overhead ~0.35 us, so fat
    tiles are needed to hit the HBM roofline); TM stays 128-512 so the f32
    accumulator / epilogue live-range stays small. Both divide n_pad.
    """
    if n <= 512:
        tm = 128
        n_pad = _round_up(n, tm)
        tk = n_pad                       # single reduction step
    elif n <= 4096:
        tm, tk = 256, 1024
        n_pad = _round_up(n, tk)
    else:
        tm, tk = 512, 2048
        n_pad = _round_up(n, tk)
    return tm, tk, n_pad


# ----------------------------------------------------------------------------
# kernel 1: per-row-tile feature transform with fused [W_l | W_r] RHS
#   h = x @ [W_l | W_r]  ->  xw = h[:, :Fout],  self_h = h[:, Fout:] + b
# ----------------------------------------------------------------------------
def _transform_kernel(x_ref, w_ref, b_ref, xw_ref, sh_ref, *, fout_p):
    # bf16 x bf16 -> f32 accumulate on the MXU; single pass over x.
    h = jnp.dot(x_ref[...], w_ref[...], preferred_element_type=jnp.float32)
    xw_ref[...] = h[:, :fout_p].astype(xw_ref.dtype)
    sh_ref[...] = (h[:, fout_p:] + b_ref[...]).astype(sh_ref.dtype)


def sage_transform(x, w_cat, b2d, *, tm, fout_p, vmem_cap):
    n_pad, fin_p = x.shape
    est = (2 * tm * fin_p * 2            # x tile, double-buffered bf16
           + 2 * fin_p * 2 * fout_p * 2  # fused weights (resident) bf16
           + 2 * fout_p * 4              # bias
           + 2 * 2 * tm * fout_p * 2)    # two bf16 outputs
    vmem_limit = int(min(vmem_cap - (2 << 20), max(32 << 20, 2 * est)))

    kernel = functools.partial(_transform_kernel, fout_p=fout_p)
    return pl.pallas_call(
        kernel,
        out_shape=(jax.ShapeDtypeStruct((n_pad, fout_p), jnp.bfloat16),
                   jax.ShapeDtypeStruct((n_pad, fout_p), jnp.bfloat16)),
        grid=(n_pad // tm,),
        in_specs=[
            pl.BlockSpec((tm, fin_p), lambda i: (i, 0)),
            pl.BlockSpec((fin_p, 2 * fout_p), lambda i: (0, 0)),  # weights resident
            pl.BlockSpec((1, fout_p), lambda i: (0, 0)),
        ],
        out_specs=(pl.BlockSpec((tm, fout_p), lambda i: (i, 0)),
                   pl.BlockSpec((tm, fout_p), lambda i: (i, 0))),
        compiler_params=pltpu.CompilerParams(
            dimension_semantics=("parallel",),
            vmem_limit_bytes=vmem_limit),
    )(x, w_cat, b2d)


# ----------------------------------------------------------------------------
# kernel 2: tiled aggregation  out = A @ xw + self_h  (+ relu / log_softmax)
# ----------------------------------------------------------------------------
def _aggregate_kernel(a_ref, xw_ref, sh_ref, o_ref, acc_ref, *,
                      tk, xw_resident, apply_relu, apply_log_softmax, f_out):
    k = pl.program_id(1)

    @pl.when(k == 0)
    def _():
        # fold the self/root term into the accumulator init (no separate add)
        acc_ref[...] = sh_ref[...].astype(jnp.float32)

    if xw_resident:
        off = pl.multiple_of(k * tk, tk)
        xw = xw_ref[pl.ds(off, tk), :]       # slice the VMEM-resident xw
    else:
        xw = xw_ref[...]                     # streamed K-slab

    # (TM, TK) bf16 @ (TK, Fout_p) bf16 -> f32 accumulate on the MXU
    acc_ref[...] += jnp.dot(a_ref[...], xw, preferred_element_type=jnp.float32)

    @pl.when(k == pl.num_programs(1) - 1)
    def _():
        h = acc_ref[...]
        if apply_relu:
            h = jnp.maximum(h, 0.0)
        if apply_log_softmax:
            # mask padded feature columns out of the softmax
            col = jax.lax.broadcasted_iota(jnp.int32, h.shape, 1)
            valid = col < f_out
            h = jnp.where(valid, h, -1e30)
            m = jnp.max(h, axis=1, keepdims=True)
            s = h - m
            lse = jnp.log(jnp.sum(jnp.where(valid, jnp.exp(s), 0.0),
                                  axis=1, keepdims=True))
            h = s - lse
        o_ref[...] = h.astype(o_ref.dtype)


def sage_aggregate(a, xw, sh, *, tm, tk, apply_relu, apply_log_softmax,
                   f_out, out_dtype, vmem_cap):
    n_pad = a.shape[0]
    fout_p = xw.shape[1]
    out_bytes = jnp.dtype(out_dtype).itemsize

    # VMEM accounting (everything counted at 2 pipeline buffers to be safe)
    fixed = (2 * tm * tk * 2                 # A tiles, bf16
             + 2 * tm * fout_p * 2           # self term, bf16
             + 2 * tm * fout_p * out_bytes   # output tile
             + tm * fout_p * 4)              # f32 accumulator scratch
    resident_cost = 2 * n_pad * fout_p * 2   # whole xw, bf16
    budget = (vmem_cap * 3) // 4
    xw_resident = (fixed + resident_cost) <= budget

    if xw_resident:
        # whole-array block with constant index map -> DMA'd once, stays in VMEM
        xw_spec = pl.BlockSpec((n_pad, fout_p), lambda i, k: (0, 0))
        est = fixed + resident_cost
    else:
        xw_spec = pl.BlockSpec((tk, fout_p), lambda i, k: (k, 0))
        est = fixed + 2 * tk * fout_p * 2

    vmem_limit = int(min(vmem_cap - (2 << 20), max(32 << 20, 2 * est)))

    kernel = functools.partial(_aggregate_kernel,
                               tk=tk,
                               xw_resident=xw_resident,
                               apply_relu=apply_relu,
                               apply_log_softmax=apply_log_softmax,
                               f_out=f_out)
    return pl.pallas_call(
        kernel,
        out_shape=jax.ShapeDtypeStruct((n_pad, fout_p), out_dtype),
        grid=(n_pad // tm, n_pad // tk),
        in_specs=[
            pl.BlockSpec((tm, tk), lambda i, k: (i, k)),        # A tile
            xw_spec,                                            # xw (resident or slab)
            pl.BlockSpec((tm, fout_p), lambda i, k: (i, 0)),    # self term (resident over k)
        ],
        out_specs=pl.BlockSpec((tm, fout_p), lambda i, k: (i, 0)),
        scratch_shapes=[pltpu.VMEM((tm, fout_p), jnp.float32)],
        compiler_params=pltpu.CompilerParams(
            dimension_semantics=("parallel", "arbitrary"),
            vmem_limit_bytes=vmem_limit),
    )(a, xw, sh)


# ----------------------------------------------------------------------------
# glue (plain JAX): dense mean-aggregation matrix, params, forward
# ----------------------------------------------------------------------------
def build_mean_adj(edge_index, num_nodes):
    """Dense mean-aggregation matrix from edge_index (2, E). src->dst messages."""
    src, dst = edge_index[0], edge_index[1]
    adj = jnp.zeros((num_nodes, num_nodes), jnp.float32)
    adj = adj.at[dst, src].add(1.0)
    deg = jnp.sum(adj, axis=1, keepdims=True)
    return adj / jnp.maximum(deg, 1.0)


def init_graphsage_params(key, input_dim, hidden_dims, output_dim):
    """Each SAGEConv: W_l (Fin,Fout) for neighbors, W_r (Fin,Fout) for self, b (Fout,)."""
    dims = [input_dim] + list(hidden_dims) + [output_dim]
    params = []
    for fin, fout in zip(dims[:-1], dims[1:]):
        key, k1, k2 = jax.random.split(key, 3)
        w_l = jax.random.normal(k1, (fin, fout), jnp.float32) * 0.1
        w_r = jax.random.normal(k2, (fin, fout), jnp.float32) * 0.1
        b = jnp.zeros((fout,), jnp.float32)
        params.append((w_l, w_r, b))
    return params


def graphsage_forward(params, x, edge_index):
    n, f_in = x.shape
    output_dim = params[-1][0].shape[1]

    vmem_cap = _vmem_capacity_bytes()
    tm, tk, n_pad = _pick_tiles(n)
    tm_t = min(tm, 256)  # transform kernel row tile (divides n_pad)

    # mean-aggregation matrix: normalize in f32, cast to bf16 BEFORE padding so
    # no padded f32 copy of the N^2 operand is ever materialized.
    a = _pad2d(build_mean_adj(edge_index, n).astype(jnp.bfloat16), n_pad, n_pad)

    # bf16 node features, padded (zeros in the pad region stay exact zeros).
    h = _pad2d(x.astype(jnp.bfloat16), n_pad, _round_up(f_in, 128))

    num_layers = len(params)
    for li, (w_l, w_r, b) in enumerate(params):
        f_in_l, f_out_l = w_l.shape
        fin_p = _round_up(f_in_l, 128)
        fout_p = _round_up(f_out_l, 128)

        # fused [W_l | W_r] RHS (fills a 2*Fout_p-wide MXU pass), bf16
        w_cat = jnp.concatenate(
            [_pad2d(w_l, fin_p, fout_p), _pad2d(w_r, fin_p, fout_p)],
            axis=1).astype(jnp.bfloat16)
        b_p = jnp.pad(b, (0, fout_p - f_out_l)).reshape(1, fout_p)

        is_last = li == num_layers - 1
        xw, self_h = sage_transform(h, w_cat, b_p, tm=tm_t, fout_p=fout_p,
                                    vmem_cap=vmem_cap)
        h = sage_aggregate(a, xw, self_h, tm=tm, tk=tk,
                           apply_relu=not is_last,
                           apply_log_softmax=is_last,
                           f_out=f_out_l,
                           out_dtype=jnp.float32 if is_last else jnp.bfloat16,
                           vmem_cap=vmem_cap)

    return h[:n, :output_dim]


# ----------------------------------------------------------------------------
if __name__ == "__main__":
    key = jax.random.PRNGKey(0)

    # small, deterministic problem: 16 nodes, input_dim=8, hidden=[16, 32], output=8
    num_nodes = 16
    input_dim = 8
    hidden_dims = [16, 32]
    output_dim = 8

    key, kx, ke = jax.random.split(key, 3)
    x = jax.random.normal(kx, (num_nodes, input_dim), jnp.float32)

    # deterministic graph: a ring plus a few extra edges
    ring_src = jnp.arange(num_nodes, dtype=jnp.int32)
    ring_dst = (ring_src + 1) % num_nodes
    extra_src = jax.random.randint(ke, (8,), 0, num_nodes, dtype=jnp.int32)
    extra_dst = (extra_src * 5 + 3) % num_nodes
    edge_index = jnp.stack([jnp.concatenate([ring_src, extra_src]),
                            jnp.concatenate([ring_dst, extra_dst])], axis=0)

    params = init_graphsage_params(key, input_dim, hidden_dims, output_dim)

    out = graphsage_forward(params, x, edge_index)
    jax.block_until_ready(out)

    assert out.shape == (num_nodes, output_dim)
    # rows of log_softmax output exponentiate-and-sum to 1
    row_sums = jnp.sum(jnp.exp(out), axis=1)
    assert jnp.allclose(row_sums, jnp.ones_like(row_sums), atol=1e-4)

    print("KERNEL_OK")
</pallas_src>

<mosaic_0001>
module attributes {stable_mosaic.version = 11 : i64} {
  func.func @_transform_kernel(%arg0: i32, %arg1: memref<128x128xbf16, #tpu.memory_space<vmem>>, %arg2: memref<128x256xbf16, #tpu.memory_space<vmem>>, %arg3: memref<1x128xf32, #tpu.memory_space<vmem>>, %arg4: memref<128x128xbf16, #tpu.memory_space<vmem>>, %arg5: memref<128x128xbf16, #tpu.memory_space<vmem>>) attributes {dimension_semantics = [#tpu.dimension_semantics<parallel>], iteration_bounds = array<i64: 1>, scalar_prefetch = 0 : i64, scratch_operands = 0 : i64, tpu.core_type = #tpu.core_type<tc>, window_params = [{transform_indices = @transform_0, window_bounds = array<i64: 128, 128>}, {pipeline_mode = #tpu.pipeline_mode<synchronous>, transform_indices = @transform_1, window_bounds = array<i64: 128, 256>}, {pipeline_mode = #tpu.pipeline_mode<synchronous>, transform_indices = @transform_2, window_bounds = array<i64: 1, 128>}, {transform_indices = @transform_3, window_bounds = array<i64: 128, 128>}, {transform_indices = @transform_4, window_bounds = array<i64: 128, 128>}]} {
    %c0 = arith.constant 0 : index
    %c0_0 = arith.constant 0 : index
    %0 = vector.load %arg1[%c0, %c0_0] : memref<128x128xbf16, #tpu.memory_space<vmem>>, vector<128x128xbf16>
    %c0_1 = arith.constant 0 : index
    %c0_2 = arith.constant 0 : index
    %1 = vector.load %arg2[%c0_1, %c0_2] : memref<128x256xbf16, #tpu.memory_space<vmem>>, vector<128x256xbf16>
    %cst = arith.constant dense<0.000000e+00> : vector<128x256xf32>
    %2 = tpu.matmul %0, %1, %cst {dimension_numbers = #tpu.dot_dimension_numbers<[1], [0], [0], [1], [0, 0, 1, 1], [], []>} : vector<128x128xbf16>, vector<128x256xbf16>, vector<128x256xf32> -> vector<128x256xf32>
    %3 = vector.extract_strided_slice %2 {offsets = [0, 0], sizes = [128, 128], strides = [1, 1]} : vector<128x256xf32> to vector<128x128xf32>
    %4 = arith.truncf %3 : vector<128x128xf32> to vector<128x128xbf16>
    %c0_3 = arith.constant 0 : index
    %c0_4 = arith.constant 0 : index
    %5 = vector.load %arg4[%c0_3, %c0_4] : memref<128x128xbf16, #tpu.memory_space<vmem>>, vector<128x128xbf16>
    tpu.vector_store %arg4[%c0_3, %c0_4], %4 {strides = array<i32>} : memref<128x128xbf16, #tpu.memory_space<vmem>>, vector<128x128xbf16>,
    %6 = vector.extract_strided_slice %2 {offsets = [0, 128], sizes = [128, 128], strides = [1, 1]} : vector<128x256xf32> to vector<128x128xf32>
    %c0_5 = arith.constant 0 : index
    %c0_6 = arith.constant 0 : index
    %7 = vector.load %arg3[%c0_5, %c0_6] : memref<1x128xf32, #tpu.memory_space<vmem>>, vector<1x128xf32>
    %8 = vector.broadcast %7 : vector<1x128xf32> to vector<128x128xf32>
    %9 = arith.addf %6, %8 : vector<128x128xf32>
    %10 = arith.truncf %9 : vector<128x128xf32> to vector<128x128xbf16>
    %c0_7 = arith.constant 0 : index
    %c0_8 = arith.constant 0 : index
    %11 = vector.load %arg5[%c0_7, %c0_8] : memref<128x128xbf16, #tpu.memory_space<vmem>>, vector<128x128xbf16>
    tpu.vector_store %arg5[%c0_7, %c0_8], %10 {strides = array<i32>} : memref<128x128xbf16, #tpu.memory_space<vmem>>, vector<128x128xbf16>,
    return
  }
  func.func @transform_0(%arg0: i32) -> (i32, i32) {
    %c0_i32 = arith.constant 0 : i32
    %c0_i32_0 = arith.constant 0 : i32
    return %arg0, %c0_i32 : i32, i32
  }
  func.func @transform_1(%arg0: i32) -> (i32, i32) {
    %c0_i32 = arith.constant 0 : i32
    %c0_i32_0 = arith.constant 0 : i32
    %c0_i32_1 = arith.constant 0 : i32
    return %c0_i32, %c0_i32_0 : i32, i32
  }
  func.func @transform_2(%arg0: i32) -> (i32, i32) {
    %c0_i32 = arith.constant 0 : i32
    %c0_i32_0 = arith.constant 0 : i32
    %c0_i32_1 = arith.constant 0 : i32
    return %c0_i32, %c0_i32_0 : i32, i32
  }
  func.func @transform_3(%arg0: i32) -> (i32, i32) {
    %c0_i32 = arith.constant 0 : i32
    %c0_i32_0 = arith.constant 0 : i32
    return %arg0, %c0_i32 : i32, i32
  }
  func.func @transform_4(%arg0: i32) -> (i32, i32) {
    %c0_i32 = arith.constant 0 : i32
    %c0_i32_0 = arith.constant 0 : i32
    return %arg0, %c0_i32 : i32, i32
  }
}

</mosaic_0001>

<bundles_post_ra>
// kernel: tpu_custom_call.1
= control target key start
LH: loop header
LB: loop body
LE: loop exit
PB: predicated region body
PF: predicated region fallthrough
CT: control target
= control target key end

     0   :  { %10 = vsyncpa [#allocation3], 0  ;;  %s848_s0 = inlined_call_operand.hbm [shape: bf16[128,128], index: 0, kind: input, shape index: {}]   ;;  %s849_s1 = inlined_call_operand.hbm [shape: bf16[128,256], index: 1, kind: input, shape index: {}]   ;;  %s850_s2 = inlined_call_operand.vmem [shape: f32[1,128], index: 2, kind: input, shape index: {}]   ;;  %s851_s3 = inlined_call_operand.hbm [shape: bf16[128,128], index: 3, kind: output, shape index: {0}]   ;;  %s852_s4 = inlined_call_operand.hbm [shape: bf16[128,128], index: 4, kind: output, shape index: {1}]  }
   0x1   :  { %11 = vsyncpa [#allocation6], 0 }
   0x2   :  { %12 = vsyncpa [#allocation4], 0 }
   0x3   :  { %13 = vsyncpa [#allocation9], 0  ;;  %s18_s17 = sshll.u32 %s848_s0, 4  ;;  %s773_s18 = smov [#allocation2]   ;;  %s19_s17 = int_to_ptr.hbm [resolvable:$true] %s18_s17 }
   0x4   :  { %s20_s19 = sshll.u32 %s773_s18, 4  ;;  %s31_s22 = sshll.u32 %s849_s1, 4  ;;  %s21_s19 = int_to_ptr.vmem [resolvable:$true] %s20_s19  ;;  %s32_s22 = int_to_ptr.hbm [resolvable:$true] %s31_s22 }
   0x5   :  { %s774_s23 = smov 64   ;;  %s775_s24 = smov 4  }
   0x6   :  { %26 = dma.hbm_to_vmem [thread:$0]  %s19_s17, 1024, %s21_s19, [#allocation3], %s774_s23, %s774_s23, %s775_s24  }
   0x7   :  { %s776_s25 = smov [#allocation5]   ;;  %s777_s27 = smov 128  }
   0x8   :  { %s33_s26 = sshll.u32 %s776_s25, 4  ;;  %s778_s0 = smov 8   ;;  %s34_s26 = int_to_ptr.vmem [resolvable:$true] %s33_s26 }
   0x9   :  { %39 = dma.hbm_to_vmem [thread:$0]  %s32_s22, 2048, %s34_s26, [#allocation6], %s777_s27, %s777_s27, %s778_s0  }
   0xa   :  { %765 = dma.done.wait [#allocation3], 1024  }
   0xb   :  { %766 = vsyncadd [#allocation3], 4294966272 }
   0xc   :  { %767 = dma.done.wait [#allocation6], 2048  }
   0xd   :  { %768 = vsyncadd [#allocation6], 4294965248  ;;  %v520_v0 = vld [vmem:[#allocation5 + $0x70] sm:$0xf]  ;;  %v549_v1 = vld [vmem:[#allocation5 + $0x74] sm:$0xf0] }
   0xe   :  { %v548_v2 = vld [vmem:[#allocation5 + $0x74] sm:$0xf]  ;;  %v521_v3 = vor.u32 %v549_v1, %v520_v0  ;;  %v522_v4 = vld [vmem:[#allocation5 + $0x78] sm:$0xf0]  ;;  %v512_v5 = vld [vmem:[#allocation5 + $0x60] sm:$0xf] }
   0xf   :  { %v547_v6 = vld [vmem:[#allocation5 + $0x64] sm:$0xf0]  ;;  %v525_v7 = vor.u32 %v548_v2, %v522_v4  ;;  %v546_v8 = vld [vmem:[#allocation5 + $0x64] sm:$0xf]  ;;  %v514_v9 = vld [vmem:[#allocation5 + $0x68] sm:$0xf0] }
  0x10   :  { %210 = vmatpush.bf16.msra.mxu0 %v521_v3  ;;  %644 = vmatpush.bf16.msra.mxu2 %v521_v3  ;;  %v513_v10 = vor.u32 %v547_v6, %v512_v5  ;;  %v517_v11 = vor.u32 %v546_v8, %v514_v9  ;;  %v504_v12 = vld [vmem:[#allocation5 + $0x50] sm:$0xf]  ;;  %v545_v13 = vld [vmem:[#allocation5 + $0x54] sm:$0xf0]  ;;  %v544_v14 = vld [vmem:[#allocation5 + $0x54] sm:$0xf] }
  0x11   :  { %259 = vmatpush.bf16.msra.mxu1 %v525_v7  ;;  %652 = vmatpush.bf16.msra.mxu3 %v525_v7  ;;  %v506_v15 = vld [vmem:[#allocation5 + $0x58] sm:$0xf0]  ;;  %v505_v16 = vor.u32 %v545_v13, %v504_v12  ;;  %v496_v18 = vld [vmem:[#allocation5 + $0x40] sm:$0xf]  ;;  %v543_v19 = vld [vmem:[#allocation5 + $0x44] sm:$0xf0] }
  0x12   :  { %v509_v17 = vor.u32 %v544_v14, %v506_v15  ;;  %v542_v20 = vld [vmem:[#allocation5 + $0x44] sm:$0xf]  ;;  %v498_v21 = vld [vmem:[#allocation5 + $0x48] sm:$0xf0]  ;;  %v497_v22 = vor.u32 %v543_v19, %v496_v18  ;;  %v488_v24 = vld [vmem:[#allocation5 + $0x30] sm:$0xf] }
  0x13   :  { %v501_v23 = vor.u32 %v542_v20, %v498_v21  ;;  %v541_v25 = vld [vmem:[#allocation5 + $0x34] sm:$0xf0]  ;;  %v540_v26 = vld [vmem:[#allocation5 + $0x34] sm:$0xf]  ;;  %v490_v27 = vld [vmem:[#allocation5 + $0x38] sm:$0xf0] }
  0x14   :  { %211 = vmatpush.bf16.msra.mxu0 %v513_v10  ;;  %645 = vmatpush.bf16.msra.mxu2 %v513_v10  ;;  %v489_v28 = vor.u32 %v541_v25, %v488_v24  ;;  %v493_v29 = vor.u32 %v540_v26, %v490_v27  ;;  %v480_v30 = vld [vmem:[#allocation5 + $0x20] sm:$0xf]  ;;  %v539_v31 = vld [vmem:[#allocation5 + $0x24] sm:$0xf0]  ;;  %v538_v32 = vld [vmem:[#allocation5 + $0x24] sm:$0xf] }
  0x15   :  { %260 = vmatpush.bf16.msra.mxu1 %v517_v11  ;;  %653 = vmatpush.bf16.msra.mxu3 %v517_v11  ;;  %v482_v33 = vld [vmem:[#allocation5 + $0x28] sm:$0xf0]  ;;  %v481_v34 = vor.u32 %v539_v31, %v480_v30  ;;  %v472_v36 = vld [vmem:[#allocation5 + $0x10] sm:$0xf]  ;;  %v537_v37 = vld [vmem:[#allocation5 + $0x14] sm:$0xf0] }
  0x16   :  { %v485_v35 = vor.u32 %v538_v32, %v482_v33  ;;  %v536_v38 = vld [vmem:[#allocation5 + $0x14] sm:$0xf]  ;;  %v474_v39 = vld [vmem:[#allocation5 + $0x18] sm:$0xf0]  ;;  %v473_v40 = vor.u32 %v537_v37, %v472_v36  ;;  %v464_v42 = vld [vmem:[#allocation5] sm:$0xf] }
  0x17   :  { %v477_v41 = vor.u32 %v536_v38, %v474_v39  ;;  %v535_v43 = vld [vmem:[#allocation5 + $0x4] sm:$0xf0]  ;;  %v534_v44 = vld [vmem:[#allocation5 + $0x4] sm:$0xf]  ;;  %v466_v45 = vld [vmem:[#allocation5 + $0x8] sm:$0xf0] }
  0x18   :  { %212 = vmatpush.bf16.msra.mxu0 %v505_v16  ;;  %646 = vmatpush.bf16.msra.mxu2 %v505_v16  ;;  %v465_v46 = vor.u32 %v535_v43, %v464_v42  ;;  %v469_v47 = vor.u32 %v534_v44, %v466_v45  ;;  %v526_v48 = vld [vmem:[#allocation2] sm:$0xff]  ;;  %v527_v50 = vld [vmem:[#allocation2 + $0x8] sm:$0xff]  ;;  %v528_v52 = vld [vmem:[#allocation2 + $0x10] sm:$0xff]  ;;  %s398_s6 = sshll.u32 %s851_s3, 4  ;;  %s780_s7 = smov [#allocation8]   ;;  %s399_s6 = int_to_ptr.hbm [resolvable:$true] %s398_s6 }
  0x19   :  { %261 = vmatpush.bf16.msra.mxu1 %v509_v17  ;;  %654 = vmatpush.bf16.msra.mxu3 %v509_v17  ;;  %v530_v49 = vld [vmem:[#allocation2 + $0x20] sm:$0xff]  ;;  %v531_v51 = vld [vmem:[#allocation2 + $0x28] sm:$0xff]  ;;  %v532_v53 = vld [vmem:[#allocation2 + $0x30] sm:$0xff]  ;;  %s409_s8 = sshll.u32 %s780_s7, 4  ;;  %s411_s11 = sshll.u32 %s852_s4, 4  ;;  %s410_s8 = int_to_ptr.vmem [resolvable:$true] %s409_s8  ;;  %s412_s11 = int_to_ptr.hbm [resolvable:$true] %s411_s11 }
  0x1a   :  { %v529_v54 = vld [vmem:[#allocation2 + $0x18] sm:$0xff]  ;;  %v818_v58 = vld [vmem:[%s850_s2] ss:$0 sm:$0xff]  ;;  %s779_s2 = smov [#allocation7]  }
  0x1b   :  { %v533_v55 = vld [vmem:[#allocation2 + $0x38] sm:$0xff]  ;;  %s396_s29 = sshll.u32 %s779_s2, 4  ;;  %s397_s29 = int_to_ptr.vmem [resolvable:$true] %s396_s29 }
  0x1c   :  { %213 = vmatpush.bf16.msra.mxu0 %v497_v22  ;;  %647 = vmatpush.bf16.msra.mxu2 %v497_v22 }
  0x1d   :  { %262 = vmatpush.bf16.msra.mxu1 %v501_v23  ;;  %655 = vmatpush.bf16.msra.mxu3 %v501_v23 }
  0x20   :  { %214 = vmatpush.bf16.msra.mxu0 %v489_v28  ;;  %648 = vmatpush.bf16.msra.mxu2 %v489_v28 }
  0x21   :  { %263 = vmatpush.bf16.msra.mxu1 %v493_v29  ;;  %656 = vmatpush.bf16.msra.mxu3 %v493_v29 }
  0x24   :  { %215 = vmatpush.bf16.msra.mxu0 %v481_v34  ;;  %649 = vmatpush.bf16.msra.mxu2 %v481_v34 }
  0x25   :  { %264 = vmatpush.bf16.msra.mxu1 %v485_v35  ;;  %657 = vmatpush.bf16.msra.mxu3 %v485_v35 }
  0x28   :  { %216 = vmatpush.bf16.msra.mxu0 %v473_v40  ;;  %650 = vmatpush.bf16.msra.mxu2 %v473_v40 }
  0x29   :  { %265 = vmatpush.bf16.msra.mxu1 %v477_v41  ;;  %658 = vmatpush.bf16.msra.mxu3 %v477_v41 }
  0x2c   :  { %217 = vmatpush.bf16.msra.mxu0 %v465_v46  ;;  %651 = vmatpush.bf16.msra.mxu2 %v465_v46 }
  0x2d   :  { %266 = vmatpush.bf16.msra.mxu1 %v469_v47  ;;  %659 = vmatpush.bf16.msra.mxu3 %v469_v47 }
  0x2f   :  { %218 = vmatmul.bf16.vlgmr.msra.gmra.mxu0 %v526_v48  ;;  %238 = vmatmul.bf16.vlgmr.msra.gmra.mxu2 %v530_v49 }
  0x30   :  { %267 = vmatmul.bf16.vlgmr.msra.gmra.mxu1 %v526_v48  ;;  %287 = vmatmul.bf16.vlgmr.msra.gmra.mxu3 %v530_v49 }
  0x3f   :  { %223 = vmatmul.bf16.gmra.mxu0 %v527_v50  ;;  %243 = vmatmul.bf16.gmra.mxu2 %v531_v51 }
  0x40   :  { %272 = vmatmul.bf16.gmra.mxu1 %v527_v50  ;;  %292 = vmatmul.bf16.gmra.mxu3 %v531_v51 }
  0x4f   :  { %228 = vmatmul.bf16.gmra.mxu0 %v528_v52  ;;  %248 = vmatmul.bf16.gmra.mxu2 %v532_v53 }
  0x50   :  { %277 = vmatmul.bf16.gmra.mxu1 %v528_v52  ;;  %297 = vmatmul.bf16.gmra.mxu3 %v532_v53 }
  0x5f   :  { %233 = vmatmul.bf16.gmra.mxu0 %v529_v54  ;;  %253 = vmatmul.bf16.gmra.mxu2 %v533_v55 }
  0x60   :  { %282 = vmatmul.bf16.gmra.mxu1 %v529_v54  ;;  %302 = vmatmul.bf16.gmra.mxu3 %v533_v55 }
  0xac   :  { %v219_v56 = vpop.f32.mrf.mxu0 }
  0xad   :  { %v268_v57 = vpop.f32.mrf.mxu1 }
  0xae   :  { %v344_v0 = vadd.f32 %v818_v58, %v268_v57 }
  0xb2   :  { %v239_v59 = vpop.f32.mrf.mxu2 }
  0xb3   :  { %v288_v60 = vpop.f32.mrf.mxu3 }
  0xb4   :  { %v221_v61 = vpop.f32.mrf.mxu0  ;;  %v352_v6 = vadd.f32 %v818_v58, %v288_v60 }
  0xb5   :  { %v553_v62 = vpack.c.bf16 %v221_v61, %v219_v56  ;;  %v270_v63 = vpop.f32.mrf.mxu1 }
  0xb6   :  { %v345_v1 = vadd.f32 %v818_v58, %v270_v63 }
  0xb7   :  { %554 = vst [vmem:[#allocation7] sm:$0xff] %v553_v62  }
  0xb8   :  { %v593_v2 = vpack.c.bf16 %v345_v1, %v344_v0 }
  0xba   :  { %594 = vst [vmem:[#allocation8] sm:$0xff] %v593_v2   ;;  %v241_v3 = vpop.f32.mrf.mxu2 }
  0xbb   :  { %v573_v4 = vpack.c.bf16 %v241_v3, %v239_v59  ;;  %v290_v5 = vpop.f32.mrf.mxu3 }
  0xbc   :  { %v353_v7 = vadd.f32 %v818_v58, %v290_v5  ;;  %v224_v8 = vpop.f32.mrf.mxu0 }
  0xbd   :  { %633 = vst [vmem:[#allocation7 + $0x20] sm:$0xff] %v573_v4   ;;  %v273_v9 = vpop.f32.mrf.mxu1 }
  0xbe   :  { %v613_v10 = vpack.c.bf16 %v353_v7, %v352_v6  ;;  %v346_v16 = vadd.f32 %v818_v58, %v273_v9 }
  0xc0   :  { %640 = vst [vmem:[#allocation8 + $0x20] sm:$0xff] %v613_v10  }
  0xc2   :  { %v244_v11 = vpop.f32.mrf.mxu2 }
  0xc3   :  { %v293_v12 = vpop.f32.mrf.mxu3 }
  0xc4   :  { %v226_v13 = vpop.f32.mrf.mxu0  ;;  %v354_v22 = vadd.f32 %v818_v58, %v293_v12 }
  0xc5   :  { %v558_v14 = vpack.c.bf16 %v226_v13, %v224_v8  ;;  %v275_v15 = vpop.f32.mrf.mxu1 }
  0xc6   :  { %v347_v17 = vadd.f32 %v818_v58, %v275_v15 }
  0xc7   :  { %630 = vst [vmem:[#allocation7 + $0x8] sm:$0xff] %v558_v14  }
  0xc8   :  { %v598_v18 = vpack.c.bf16 %v347_v17, %v346_v16 }
  0xca   :  { %637 = vst [vmem:[#allocation8 + $0x8] sm:$0xff] %v598_v18   ;;  %v246_v19 = vpop.f32.mrf.mxu2 }
  0xcb   :  { %v578_v20 = vpack.c.bf16 %v246_v19, %v244_v11  ;;  %v295_v21 = vpop.f32.mrf.mxu3 }
  0xcc   :  { %v355_v23 = vadd.f32 %v818_v58, %v295_v21  ;;  %v229_v24 = vpop.f32.mrf.mxu0 }
  0xcd   :  { %634 = vst [vmem:[#allocation7 + $0x28] sm:$0xff] %v578_v20   ;;  %v278_v25 = vpop.f32.mrf.mxu1 }
  0xce   :  { %v618_v26 = vpack.c.bf16 %v355_v23, %v354_v22  ;;  %v348_v32 = vadd.f32 %v818_v58, %v278_v25 }
  0xd0   :  { %641 = vst [vmem:[#allocation8 + $0x28] sm:$0xff] %v618_v26  }
  0xd2   :  { %v249_v27 = vpop.f32.mrf.mxu2 }
  0xd3   :  { %v298_v28 = vpop.f32.mrf.mxu3 }
  0xd4   :  { %v231_v29 = vpop.f32.mrf.mxu0  ;;  %v356_v38 = vadd.f32 %v818_v58, %v298_v28 }
  0xd5   :  { %v563_v30 = vpack.c.bf16 %v231_v29, %v229_v24  ;;  %v280_v31 = vpop.f32.mrf.mxu1 }
  0xd6   :  { %v349_v33 = vadd.f32 %v818_v58, %v280_v31 }
  0xd7   :  { %631 = vst [vmem:[#allocation7 + $0x10] sm:$0xff] %v563_v30  }
  0xd8   :  { %v603_v34 = vpack.c.bf16 %v349_v33, %v348_v32 }
  0xda   :  { %638 = vst [vmem:[#allocation8 + $0x10] sm:$0xff] %v603_v34   ;;  %v251_v35 = vpop.f32.mrf.mxu2 }
  0xdb   :  { %v583_v36 = vpack.c.bf16 %v251_v35, %v249_v27  ;;  %v300_v37 = vpop.f32.mrf.mxu3 }
  0xdc   :  { %v357_v39 = vadd.f32 %v818_v58, %v300_v37  ;;  %v234_v40 = vpop.f32.mrf.mxu0 }
  0xdd   :  { %635 = vst [vmem:[#allocation7 + $0x30] sm:$0xff] %v583_v36   ;;  %v283_v41 = vpop.f32.mrf.mxu1 }
  0xde   :  { %v623_v42 = vpack.c.bf16 %v357_v39, %v356_v38  ;;  %v350_v48 = vadd.f32 %v818_v58, %v283_v41 }
  0xe0   :  { %642 = vst [vmem:[#allocation8 + $0x30] sm:$0xff] %v623_v42  }
  0xe2   :  { %v254_v43 = vpop.f32.mrf.mxu2 }
  0xe3   :  { %v303_v44 = vpop.f32.mrf.mxu3 }
  0xe4   :  { %v236_v45 = vpop.f32.mrf.mxu0  ;;  %v358_v54 = vadd.f32 %v818_v58, %v303_v44 }
  0xe5   :  { %v568_v46 = vpack.c.bf16 %v236_v45, %v234_v40  ;;  %v285_v47 = vpop.f32.mrf.mxu1 }
  0xe6   :  { %v351_v49 = vadd.f32 %v818_v58, %v285_v47 }
  0xe7   :  { %632 = vst [vmem:[#allocation7 + $0x18] sm:$0xff] %v568_v46  }
  0xe8   :  { %v608_v50 = vpack.c.bf16 %v351_v49, %v350_v48 }
  0xea   :  { %639 = vst [vmem:[#allocation8 + $0x18] sm:$0xff] %v608_v50   ;;  %v256_v51 = vpop.f32.mrf.mxu2 }
  0xeb   :  { %v588_v52 = vpack.c.bf16 %v256_v51, %v254_v43  ;;  %v305_v53 = vpop.f32.mrf.mxu3 }
  0xec   :  { %v359_v55 = vadd.f32 %v818_v58, %v305_v53 }
  0xed   :  { %636 = vst [vmem:[#allocation7 + $0x38] sm:$0xff] %v588_v52  }
  0xee   :  { %v628_v56 = vpack.c.bf16 %v359_v55, %v358_v54  ;;  %404 = dma.vmem_to_hbm [thread:$0]  %s397_s29, 1024, %s399_s6, [#allocation4], %s774_s23, %s774_s23, %s775_s24  }
  0xf0   :  { %643 = vst [vmem:[#allocation8 + $0x38] sm:$0xff] %v628_v56  }
  0xf1   :  { %417 = dma.vmem_to_hbm [thread:$0]  %s410_s8, 1024, %s412_s11, [#allocation9], %s774_s23, %s774_s23, %s775_s24  }
  0xf2   :  { %769 = dma.done.wait [#allocation4], 1024  }
  0xf3   :  { %770 = vsyncadd [#allocation4], 4294966272 }
  0xf4   :  { %771 = dma.done.wait [#allocation9], 1024  }
  0xf5   :  { %772 = vsyncadd [#allocation9], 4294966272 }
  0xf6   :  { %426 = vsyncpa [#allocation3], 1 }
  0xf7   :  { %427 = vsyncpa [#allocation6], 1 }
  0xf8   :  { %428 = vsyncpa [#allocation4], 1 }
  0xf9   :  { %429 = vsyncpa [#allocation9], 1 }

</bundles_post_ra>
